<compile_context>
chip_gen: v6e
topology: v6e:2x2x1
jax: 0.10.0
libtpu: 0.0.40
codegen_flags: <defaults>
</compile_context>

<pallas_src>
import jax
import jax.numpy as jnp
from jax.experimental import pallas as pl
from jax.experimental.pallas import tpu as pltpu

ALPHA = 0.25
GAMMA = 2.0          # applied as an explicit square (u * u) inside the kernel

_LANE = 128
_NUM_CORE_SPLITS = 2  # leading "parallel" grid axis (both TensorCores on v7x)


def _round_up(x, m):
    return ((x + m - 1) // m) * m


def _focal_loss_kernel(loc_p_ref, loc_t_ref, cls_p_ref, cls_t_ref,
                       loc_out_ref, cls_out_ref, npos_out_ref):
    t_step = pl.program_id(1)

    # ---- init resident accumulator blocks at the first reduction step -----
    @pl.when(t_step == 0)
    def _init():
        loc_out_ref[...] = jnp.zeros_like(loc_out_ref)
        cls_out_ref[...] = jnp.zeros_like(cls_out_ref)
        npos_out_ref[...] = jnp.zeros_like(npos_out_ref)

    cls_t = cls_t_ref[...]                              # (tm, 1) int32
    pos = cls_t > 0
    pos_f = pos.astype(jnp.float32)
    valid_f = (cls_t > -1).astype(jnp.float32)

    # ---- num_pos -----------------------------------------------------------
    npos_out_ref[...] += jnp.sum(pos.astype(jnp.int32))

    # ---- smooth L1 over positive anchors (reduction='sum') -----------------
    d = loc_p_ref[...].astype(jnp.float32) - loc_t_ref[...].astype(jnp.float32)
    ad = jnp.abs(d)
    sl1 = jnp.where(ad < 1.0, 0.5 * d * d, ad - 0.5)    # (tm, 4)
    loc_out_ref[...] += jnp.sum(sl1 * pos_f)            # pos_f broadcasts over 4

    # ---- focal loss over valid (cls_targets > -1) anchors ------------------
    x = cls_p_ref[...].astype(jnp.float32)              # (tm, C)
    tm, C = x.shape
    # one_hot(y, 1+C)[:, 1:]  ==  (y == class_index+1)
    cls_idx = jax.lax.broadcasted_iota(jnp.int32, (tm, C), 1) + 1
    tgt = (cls_t == cls_idx).astype(jnp.float32)        # (tm, C)

    ax = jnp.abs(x)
    e = jnp.exp(-ax)                                    # shared exp(-|x|) (EUP)
    inv1pe = pl.reciprocal(1.0 + e, approx=True)        # cheap EUP reciprocal
    p = jnp.where(x >= 0, inv1pe, e * inv1pe)           # sigmoid(x)

    pt = p * tgt + (1.0 - p) * (1.0 - tgt)
    u = 1.0 - pt
    w = (ALPHA * tgt + (1.0 - ALPHA) * (1.0 - tgt)) * (u * u)   # (1-pt)^gamma

    # numerically stable BCE-with-logits, reusing e
    bce = jnp.maximum(x, 0.0) - x * tgt + jnp.log1p(e)

    cls_out_ref[...] += jnp.sum(w * bce * valid_f)


def focal_loss_forward(loc_preds, loc_targets, cls_preds, cls_targets,
                       *, tile_m=4096):
    """loc_preds/loc_targets: (B, N, 4) float; cls_preds: (B, N, C) float;
    cls_targets: (B, N) int.  Returns (loc_loss, cls_loss, num_pos)."""
    B, N, _ = loc_preds.shape
    C = cls_preds.shape[-1]
    M = B * N

    def _keep_float(a):
        return a if jnp.issubdtype(a.dtype, jnp.floating) else a.astype(jnp.float32)

    loc_p = _keep_float(loc_preds).reshape(M, 4)
    loc_t = _keep_float(loc_targets).reshape(M, 4)
    cls_p = _keep_float(cls_preds).reshape(M, C)
    cls_t = cls_targets.reshape(M, 1).astype(jnp.int32)

    # ---- tile size: big for HBM-roofline pipelining, clamped for small M and
    # for the v7x VMEM budget (64 MiB physical / 32 MiB default scoped).
    tile_m = max(8, min(int(tile_m), _round_up(-(-M // _NUM_CORE_SPLITS), 8)))

    def _per_buffer_bytes(tm):
        # conservative lane-padded VMEM footprint of one set of input tiles (f32)
        return 4 * tm * (_round_up(C, _LANE) + 3 * _LANE)

    while 2 * _per_buffer_bytes(tile_m) > (24 << 20) and tile_m > 256:
        tile_m //= 2
    vmem_limit = 2 * _per_buffer_bytes(tile_m) + (4 << 20)

    # ---- pad M so it divides the (core_split, tile) grid; padded rows are
    # ignore-anchors (cls_target = -1) and contribute nothing to any sum.
    m_pad = _round_up(M, _NUM_CORE_SPLITS * tile_m)
    if m_pad != M:
        pad = m_pad - M
        loc_p = jnp.pad(loc_p, ((0, pad), (0, 0)))
        loc_t = jnp.pad(loc_t, ((0, pad), (0, 0)))
        cls_p = jnp.pad(cls_p, ((0, pad), (0, 0)))
        cls_t = jnp.pad(cls_t, ((0, pad), (0, 0)), constant_values=-1)

    nt = m_pad // (_NUM_CORE_SPLITS * tile_m)
    grid = (_NUM_CORE_SPLITS, nt)

    def in_idx(c, t):
        return (c * nt + t, 0)

    def out_idx(c, t):
        return (c, 0, 0)

    # Per-core partial outputs; one (8,128) slab per core keeps the BlockSpec
    # fully (8,128)-aligned.  Every element of a slab holds the same partial
    # sum, so the wrapper reads [:, 0, 0].
    out_shapes = (
        jax.ShapeDtypeStruct((_NUM_CORE_SPLITS, 8, _LANE), jnp.float32),  # loc
        jax.ShapeDtypeStruct((_NUM_CORE_SPLITS, 8, _LANE), jnp.float32),  # cls
        jax.ShapeDtypeStruct((_NUM_CORE_SPLITS, 8, _LANE), jnp.int32),    # num_pos
    )

    bytes_accessed = int(m_pad * (2 * 4 * loc_p.dtype.itemsize
                                  + C * cls_p.dtype.itemsize + 4))
    cost = pl.CostEstimate(
        flops=int(m_pad * (20 * C + 20)),
        transcendentals=int(2 * m_pad * C),
        bytes_accessed=bytes_accessed,
    )

    loc_out, cls_out, npos_out = pl.pallas_call(
        _focal_loss_kernel,
        out_shape=out_shapes,
        grid=grid,
        in_specs=[
            pl.BlockSpec((tile_m, 4), in_idx),
            pl.BlockSpec((tile_m, 4), in_idx),
            pl.BlockSpec((tile_m, C), in_idx),
            pl.BlockSpec((tile_m, 1), in_idx),
        ],
        out_specs=(
            pl.BlockSpec((1, 8, _LANE), out_idx),
            pl.BlockSpec((1, 8, _LANE), out_idx),
            pl.BlockSpec((1, 8, _LANE), out_idx),
        ),
        compiler_params=pltpu.CompilerParams(
            dimension_semantics=("parallel", "arbitrary"),
            vmem_limit_bytes=int(vmem_limit),
        ),
        cost_estimate=cost,
    )(loc_p, loc_t, cls_p, cls_t)

    loc_loss = jnp.sum(loc_out[:, 0, 0])
    cls_loss = jnp.sum(cls_out[:, 0, 0])
    num_pos = jnp.sum(npos_out[:, 0, 0])
    return loc_loss, cls_loss, num_pos


def _focal_loss_reference(loc_preds, loc_targets, cls_preds, cls_targets):
    """Pure-JAX reference mirroring the PyTorch module (reduction='sum')."""
    C = cls_preds.shape[-1]
    cls_t = cls_targets.astype(jnp.int32)
    pos = cls_t > 0
    valid = cls_t > -1
    num_pos = jnp.sum(pos.astype(jnp.int32))

    d = loc_preds.astype(jnp.float32) - loc_targets.astype(jnp.float32)
    ad = jnp.abs(d)
    sl1 = jnp.where(ad < 1.0, 0.5 * d * d, ad - 0.5)
    loc_loss = jnp.sum(sl1 * pos[..., None].astype(jnp.float32))

    x = cls_preds.astype(jnp.float32)
    t = jax.nn.one_hot(cls_t, C + 1, dtype=jnp.float32)[..., 1:]
    p = jax.nn.sigmoid(x)
    pt = p * t + (1.0 - p) * (1.0 - t)
    w = (ALPHA * t + (1.0 - ALPHA) * (1.0 - t)) * (1.0 - pt) ** 2
    bce = jnp.maximum(x, 0.0) - x * t + jnp.log1p(jnp.exp(-jnp.abs(x)))
    cls_loss = jnp.sum(w * bce * valid[..., None].astype(jnp.float32))
    return loc_loss, cls_loss, num_pos


if __name__ == "__main__":
    key = jax.random.PRNGKey(0)
    k1, k2, k3, k4 = jax.random.split(key, 4)

    B, N, num_classes = 2, 16, 8   # small synthetic shapes

    loc_preds = jax.random.normal(k1, (B, N, 4), dtype=jnp.float32)
    loc_targets = jax.random.normal(k2, (B, N, 4), dtype=jnp.float32)
    cls_preds = jax.random.normal(k3, (B, N, num_classes), dtype=jnp.float32)
    # class ids in {-1, 0, ..., num_classes}: -1 = ignore, 0 = background
    cls_targets = jax.random.randint(k4, (B, N), -1, num_classes + 1,
                                     dtype=jnp.int32)

    loc_loss, cls_loss, num_pos = focal_loss_forward(
        loc_preds, loc_targets, cls_preds, cls_targets)
    jax.block_until_ready((loc_loss, cls_loss, num_pos))

    r_loc, r_cls, r_np = _focal_loss_reference(
        loc_preds, loc_targets, cls_preds, cls_targets)
    assert jnp.allclose(loc_loss, r_loc, rtol=1e-2, atol=1e-2), (loc_loss, r_loc)
    assert jnp.allclose(cls_loss, r_cls, rtol=1e-2, atol=1e-2), (cls_loss, r_cls)
    assert int(num_pos) == int(r_np), (num_pos, r_np)

    print("KERNEL_OK")
</pallas_src>

<mosaic_0001>
module attributes {stable_mosaic.version = 11 : i64} {
  func.func @_focal_loss_kernel(%arg0: i32, %arg1: i32, %arg2: memref<16x4xf32, #tpu.memory_space<vmem>>, %arg3: memref<16x4xf32, #tpu.memory_space<vmem>>, %arg4: memref<16x8xf32, #tpu.memory_space<vmem>>, %arg5: memref<16x1xi32, #tpu.memory_space<vmem>>, %arg6: memref<1x8x128xf32, #tpu.memory_space<vmem>>, %arg7: memref<1x8x128xf32, #tpu.memory_space<vmem>>, %arg8: memref<1x8x128xi32, #tpu.memory_space<vmem>>) attributes {dimension_semantics = [#tpu.dimension_semantics<parallel>, #tpu.dimension_semantics<arbitrary>], iteration_bounds = array<i64: 2, 1>, scalar_prefetch = 0 : i64, scratch_operands = 0 : i64, tpu.core_type = #tpu.core_type<tc>, window_params = [{transform_indices = @transform_0, window_bounds = array<i64: 16, 4>}, {transform_indices = @transform_1, window_bounds = array<i64: 16, 4>}, {transform_indices = @transform_2, window_bounds = array<i64: 16, 8>}, {transform_indices = @transform_3, window_bounds = array<i64: 16, 1>}, {transform_indices = @transform_4, window_bounds = array<i64: 1, 8, 128>}, {transform_indices = @transform_5, window_bounds = array<i64: 1, 8, 128>}, {transform_indices = @transform_6, window_bounds = array<i64: 1, 8, 128>}]} {
    %c0_i32 = arith.constant 0 : i32
    %0 = arith.cmpi eq, %arg1, %c0_i32 : i32
    %1 = arith.extui %0 : i1 to i32
    %c0_i32_0 = arith.constant 0 : i32
    %2 = arith.cmpi ne, %1, %c0_i32_0 : i32
    scf.if %2 {
      %cst_42 = arith.constant 0.000000e+00 : f32
      %97 = vector.broadcast %cst_42 : f32 to vector<1x8x128xf32>
      %c0_43 = arith.constant 0 : index
      %c0_44 = arith.constant 0 : index
      %c0_45 = arith.constant 0 : index
      %98 = vector.load %arg6[%c0_43, %c0_44, %c0_45] : memref<1x8x128xf32, #tpu.memory_space<vmem>>, vector<1x8x128xf32>
      tpu.vector_store %arg6[%c0_43, %c0_44, %c0_45], %97 {strides = array<i32>} : memref<1x8x128xf32, #tpu.memory_space<vmem>>, vector<1x8x128xf32>,
      %cst_46 = arith.constant 0.000000e+00 : f32
      %99 = vector.broadcast %cst_46 : f32 to vector<1x8x128xf32>
      %c0_47 = arith.constant 0 : index
      %c0_48 = arith.constant 0 : index
      %c0_49 = arith.constant 0 : index
      %100 = vector.load %arg7[%c0_47, %c0_48, %c0_49] : memref<1x8x128xf32, #tpu.memory_space<vmem>>, vector<1x8x128xf32>
      tpu.vector_store %arg7[%c0_47, %c0_48, %c0_49], %99 {strides = array<i32>} : memref<1x8x128xf32, #tpu.memory_space<vmem>>, vector<1x8x128xf32>,
      %c0_i32_50 = arith.constant 0 : i32
      %101 = vector.broadcast %c0_i32_50 : i32 to vector<1x8x128xi32>
      %c0_51 = arith.constant 0 : index
      %c0_52 = arith.constant 0 : index
      %c0_53 = arith.constant 0 : index
      %102 = vector.load %arg8[%c0_51, %c0_52, %c0_53] : memref<1x8x128xi32, #tpu.memory_space<vmem>>, vector<1x8x128xi32>
      tpu.vector_store %arg8[%c0_51, %c0_52, %c0_53], %101 {strides = array<i32>} : memref<1x8x128xi32, #tpu.memory_space<vmem>>, vector<1x8x128xi32>,
    } else {
    }
    %c0 = arith.constant 0 : index
    %c0_1 = arith.constant 0 : index
    %3 = vector.load %arg5[%c0, %c0_1] : memref<16x1xi32, #tpu.memory_space<vmem>>, vector<16x1xi32>
    %c0_i32_2 = arith.constant 0 : i32
    %4 = vector.broadcast %c0_i32_2 : i32 to vector<16x1xi32>
    %5 = arith.cmpi sgt, %3, %4 : vector<16x1xi32>
    %6 = arith.extui %5 : vector<16x1xi1> to vector<16x1xi32>
    %7 = arith.sitofp %6 : vector<16x1xi32> to vector<16x1xf32>
    %c-1_i32 = arith.constant -1 : i32
    %8 = vector.broadcast %c-1_i32 : i32 to vector<16x1xi32>
    %9 = arith.cmpi sgt, %3, %8 : vector<16x1xi32>
    %10 = arith.extui %9 : vector<16x1xi1> to vector<16x1xi32>
    %11 = arith.sitofp %10 : vector<16x1xi32> to vector<16x1xf32>
    %c0_3 = arith.constant 0 : index
    %c0_4 = arith.constant 0 : index
    %c0_5 = arith.constant 0 : index
    %12 = vector.load %arg8[%c0_3, %c0_4, %c0_5] : memref<1x8x128xi32, #tpu.memory_space<vmem>>, vector<1x8x128xi32>
    %13 = arith.extui %5 : vector<16x1xi1> to vector<16x1xi32>
    %14 = vector.shape_cast %13 : vector<16x1xi32> to vector<1x16x1xi32>
    %cst = arith.constant dense<0> : vector<1xi32>
    %15 = vector.multi_reduction <add>, %14, %cst [1, 2] : vector<1x16x1xi32> to vector<1xi32>
    %16 = vector.shape_cast %15 : vector<1xi32> to vector<1x1x1xi32>
    %17 = vector.extract %16[0, 0, 0] : i32 from vector<1x1x1xi32>
    %18 = vector.broadcast %17 : i32 to vector<1x8x128xi32>
    %19 = arith.addi %12, %18 : vector<1x8x128xi32>
    %c0_6 = arith.constant 0 : index
    %c0_7 = arith.constant 0 : index
    %c0_8 = arith.constant 0 : index
    %20 = vector.load %arg8[%c0_6, %c0_7, %c0_8] : memref<1x8x128xi32, #tpu.memory_space<vmem>>, vector<1x8x128xi32>
    tpu.vector_store %arg8[%c0_6, %c0_7, %c0_8], %19 {strides = array<i32>} : memref<1x8x128xi32, #tpu.memory_space<vmem>>, vector<1x8x128xi32>,
    %c0_9 = arith.constant 0 : index
    %c0_10 = arith.constant 0 : index
    %21 = vector.load %arg2[%c0_9, %c0_10] : memref<16x4xf32, #tpu.memory_space<vmem>>, vector<16x4xf32>
    %c0_11 = arith.constant 0 : index
    %c0_12 = arith.constant 0 : index
    %22 = vector.load %arg3[%c0_11, %c0_12] : memref<16x4xf32, #tpu.memory_space<vmem>>, vector<16x4xf32>
    %23 = arith.subf %21, %22 : vector<16x4xf32>
    %24 = math.absf %23 : vector<16x4xf32>
    %cst_13 = arith.constant 1.000000e+00 : f32
    %25 = vector.broadcast %cst_13 : f32 to vector<16x4xf32>
    %26 = arith.cmpf olt, %24, %25 : vector<16x4xf32>
    %cst_14 = arith.constant 5.000000e-01 : f32
    %27 = vector.broadcast %cst_14 : f32 to vector<16x4xf32>
    %28 = arith.mulf %27, %23 : vector<16x4xf32>
    %29 = arith.mulf %28, %23 : vector<16x4xf32>
    %cst_15 = arith.constant 5.000000e-01 : f32
    %30 = vector.broadcast %cst_15 : f32 to vector<16x4xf32>
    %31 = arith.subf %24, %30 : vector<16x4xf32>
    %32 = arith.select %26, %29, %31 : vector<16x4xi1>, vector<16x4xf32>
    %c0_16 = arith.constant 0 : index
    %c0_17 = arith.constant 0 : index
    %c0_18 = arith.constant 0 : index
    %33 = vector.load %arg6[%c0_16, %c0_17, %c0_18] : memref<1x8x128xf32, #tpu.memory_space<vmem>>, vector<1x8x128xf32>
    %34 = vector.broadcast %7 : vector<16x1xf32> to vector<16x4xf32>
    %35 = arith.mulf %32, %34 : vector<16x4xf32>
    %36 = vector.shape_cast %35 : vector<16x4xf32> to vector<1x16x4xf32>
    %cst_19 = arith.constant dense<0.000000e+00> : vector<1xf32>
    %37 = vector.multi_reduction <add>, %36, %cst_19 [1, 2] : vector<1x16x4xf32> to vector<1xf32>
    %38 = vector.shape_cast %37 : vector<1xf32> to vector<1x1x1xf32>
    %39 = vector.extract %38[0, 0, 0] : f32 from vector<1x1x1xf32>
    %40 = vector.broadcast %39 : f32 to vector<1x8x128xf32>
    %41 = arith.addf %33, %40 : vector<1x8x128xf32>
    %c0_20 = arith.constant 0 : index
    %c0_21 = arith.constant 0 : index
    %c0_22 = arith.constant 0 : index
    %42 = vector.load %arg6[%c0_20, %c0_21, %c0_22] : memref<1x8x128xf32, #tpu.memory_space<vmem>>, vector<1x8x128xf32>
    tpu.vector_store %arg6[%c0_20, %c0_21, %c0_22], %41 {strides = array<i32>} : memref<1x8x128xf32, #tpu.memory_space<vmem>>, vector<1x8x128xf32>,
    %c0_23 = arith.constant 0 : index
    %c0_24 = arith.constant 0 : index
    %43 = vector.load %arg4[%c0_23, %c0_24] : memref<16x8xf32, #tpu.memory_space<vmem>>, vector<16x8xf32>
    %44 = tpu.iota {dimensions = array<i32: 1>} : vector<16x8xi32>
    %c1_i32 = arith.constant 1 : i32
    %45 = vector.broadcast %c1_i32 : i32 to vector<16x8xi32>
    %46 = arith.addi %44, %45 : vector<16x8xi32>
    %47 = vector.broadcast %3 : vector<16x1xi32> to vector<16x8xi32>
    %48 = arith.cmpi eq, %47, %46 : vector<16x8xi32>
    %49 = arith.extui %48 : vector<16x8xi1> to vector<16x8xi32>
    %50 = arith.sitofp %49 : vector<16x8xi32> to vector<16x8xf32>
    %51 = math.absf %43 : vector<16x8xf32>
    %cst_25 = arith.constant 0.000000e+00 : f32
    %52 = vector.broadcast %cst_25 : f32 to vector<16x8xf32>
    %53 = arith.subf %52, %51 : vector<16x8xf32>
    %54 = math.exp %53 : vector<16x8xf32>
    %cst_26 = arith.constant 1.000000e+00 : f32
    %55 = vector.broadcast %cst_26 : f32 to vector<16x8xf32>
    %56 = arith.addf %55, %54 : vector<16x8xf32>
    %57 = tpu.reciprocal %56 {approx = true} : vector<16x8xf32> -> vector<16x8xf32>
    %cst_27 = arith.constant 0.000000e+00 : f32
    %58 = vector.broadcast %cst_27 : f32 to vector<16x8xf32>
    %59 = arith.cmpf oge, %43, %58 : vector<16x8xf32>
    %60 = arith.mulf %54, %57 : vector<16x8xf32>
    %61 = arith.select %59, %57, %60 : vector<16x8xi1>, vector<16x8xf32>
    %62 = arith.mulf %61, %50 : vector<16x8xf32>
    %cst_28 = arith.constant 1.000000e+00 : f32
    %63 = vector.broadcast %cst_28 : f32 to vector<16x8xf32>
    %64 = arith.subf %63, %61 : vector<16x8xf32>
    %cst_29 = arith.constant 1.000000e+00 : f32
    %65 = vector.broadcast %cst_29 : f32 to vector<16x8xf32>
    %66 = arith.subf %65, %50 : vector<16x8xf32>
    %67 = arith.mulf %64, %66 : vector<16x8xf32>
    %68 = arith.addf %62, %67 : vector<16x8xf32>
    %cst_30 = arith.constant 1.000000e+00 : f32
    %69 = vector.broadcast %cst_30 : f32 to vector<16x8xf32>
    %70 = arith.subf %69, %68 : vector<16x8xf32>
    %cst_31 = arith.constant 2.500000e-01 : f32
    %71 = vector.broadcast %cst_31 : f32 to vector<16x8xf32>
    %72 = arith.mulf %71, %50 : vector<16x8xf32>
    %cst_32 = arith.constant 1.000000e+00 : f32
    %73 = vector.broadcast %cst_32 : f32 to vector<16x8xf32>
    %74 = arith.subf %73, %50 : vector<16x8xf32>
    %cst_33 = arith.constant 7.500000e-01 : f32
    %75 = vector.broadcast %cst_33 : f32 to vector<16x8xf32>
    %76 = arith.mulf %75, %74 : vector<16x8xf32>
    %77 = arith.addf %72, %76 : vector<16x8xf32>
    %78 = arith.mulf %70, %70 : vector<16x8xf32>
    %79 = arith.mulf %77, %78 : vector<16x8xf32>
    %cst_34 = arith.constant 0.000000e+00 : f32
    %80 = vector.broadcast %cst_34 : f32 to vector<16x8xf32>
    %81 = arith.maximumf %43, %80 : vector<16x8xf32>
    %82 = arith.mulf %43, %50 : vector<16x8xf32>
    %83 = arith.subf %81, %82 : vector<16x8xf32>
    %84 = math.log1p %54 : vector<16x8xf32>
    %85 = arith.addf %83, %84 : vector<16x8xf32>
    %c0_35 = arith.constant 0 : index
    %c0_36 = arith.constant 0 : index
    %c0_37 = arith.constant 0 : index
    %86 = vector.load %arg7[%c0_35, %c0_36, %c0_37] : memref<1x8x128xf32, #tpu.memory_space<vmem>>, vector<1x8x128xf32>
    %87 = arith.mulf %79, %85 : vector<16x8xf32>
    %88 = vector.broadcast %11 : vector<16x1xf32> to vector<16x8xf32>
    %89 = arith.mulf %87, %88 : vector<16x8xf32>
    %90 = vector.shape_cast %89 : vector<16x8xf32> to vector<1x16x8xf32>
    %cst_38 = arith.constant dense<0.000000e+00> : vector<1xf32>
    %91 = vector.multi_reduction <add>, %90, %cst_38 [1, 2] : vector<1x16x8xf32> to vector<1xf32>
    %92 = vector.shape_cast %91 : vector<1xf32> to vector<1x1x1xf32>
    %93 = vector.extract %92[0, 0, 0] : f32 from vector<1x1x1xf32>
    %94 = vector.broadcast %93 : f32 to vector<1x8x128xf32>
    %95 = arith.addf %86, %94 : vector<1x8x128xf32>
    %c0_39 = arith.constant 0 : index
    %c0_40 = arith.constant 0 : index
    %c0_41 = arith.constant 0 : index
    %96 = vector.load %arg7[%c0_39, %c0_40, %c0_41] : memref<1x8x128xf32, #tpu.memory_space<vmem>>, vector<1x8x128xf32>
    tpu.vector_store %arg7[%c0_39, %c0_40, %c0_41], %95 {strides = array<i32>} : memref<1x8x128xf32, #tpu.memory_space<vmem>>, vector<1x8x128xf32>,
    return
  }
  func.func @transform_0(%arg0: i32, %arg1: i32) -> (i32, i32) {
    %c1_i32 = arith.constant 1 : i32
    %0 = arith.muli %arg0, %c1_i32 : i32
    %1 = arith.addi %0, %arg1 : i32
    %c0_i32 = arith.constant 0 : i32
    %c0_i32_0 = arith.constant 0 : i32
    return %1, %c0_i32 : i32, i32
  }
  func.func @transform_1(%arg0: i32, %arg1: i32) -> (i32, i32) {
    %c1_i32 = arith.constant 1 : i32
    %0 = arith.muli %arg0, %c1_i32 : i32
    %1 = arith.addi %0, %arg1 : i32
    %c0_i32 = arith.constant 0 : i32
    %c0_i32_0 = arith.constant 0 : i32
    return %1, %c0_i32 : i32, i32
  }
  func.func @transform_2(%arg0: i32, %arg1: i32) -> (i32, i32) {
    %c1_i32 = arith.constant 1 : i32
    %0 = arith.muli %arg0, %c1_i32 : i32
    %1 = arith.addi %0, %arg1 : i32
    %c0_i32 = arith.constant 0 : i32
    %c0_i32_0 = arith.constant 0 : i32
    return %1, %c0_i32 : i32, i32
  }
  func.func @transform_3(%arg0: i32, %arg1: i32) -> (i32, i32) {
    %c1_i32 = arith.constant 1 : i32
    %0 = arith.muli %arg0, %c1_i32 : i32
    %1 = arith.addi %0, %arg1 : i32
    %c0_i32 = arith.constant 0 : i32
    %c0_i32_0 = arith.constant 0 : i32
    return %1, %c0_i32 : i32, i32
  }
  func.func @transform_4(%arg0: i32, %arg1: i32) -> (i32, i32, i32) {
    %c0_i32 = arith.constant 0 : i32
    %c0_i32_0 = arith.constant 0 : i32
    %c0_i32_1 = arith.constant 0 : i32
    return %arg0, %c0_i32, %c0_i32_0 : i32, i32, i32
  }
  func.func @transform_5(%arg0: i32, %arg1: i32) -> (i32, i32, i32) {
    %c0_i32 = arith.constant 0 : i32
    %c0_i32_0 = arith.constant 0 : i32
    %c0_i32_1 = arith.constant 0 : i32
    return %arg0, %c0_i32, %c0_i32_0 : i32, i32, i32
  }
  func.func @transform_6(%arg0: i32, %arg1: i32) -> (i32, i32, i32) {
    %c0_i32 = arith.constant 0 : i32
    %c0_i32_0 = arith.constant 0 : i32
    %c0_i32_1 = arith.constant 0 : i32
    return %arg0, %c0_i32, %c0_i32_0 : i32, i32, i32
  }
}

</mosaic_0001>

<bundles_post_ra>
// kernel: tpu_custom_call.1
= control target key start
LH: loop header
LB: loop body
LE: loop exit
PB: predicated region body
PF: predicated region fallthrough
CT: control target
= control target key end

     0   :  { %s1355_s0 = inlined_call_operand.vmem [shape: f32[32,4], index: 0, kind: input, shape index: {}]   ;;  %s1356_s1 = inlined_call_operand.vmem [shape: f32[32,4], index: 1, kind: input, shape index: {}]   ;;  %s1357_s2 = inlined_call_operand.vmem [shape: f32[32,8], index: 2, kind: input, shape index: {}]   ;;  %s1358_s3 = inlined_call_operand.vmem [shape: s32[32,1], index: 3, kind: input, shape index: {}]   ;;  %s1359_s4 = inlined_call_operand.hbm [shape: f32[2,8,128], index: 4, kind: output, shape index: {0}]   ;;  %s1360_s5 = inlined_call_operand.hbm [shape: f32[2,8,128], index: 5, kind: output, shape index: {1}]   ;;  %s1361_s6 = inlined_call_operand.hbm [shape: s32[2,8,128], index: 6, kind: output, shape index: {2}]  }
   0x1   :  { %1365 = sst [smem:[#allocation9_spill]] %s1355_s0 }
   0x2   :  { %1366 = sst [smem:[#allocation10_spill]] %s1356_s1 }
   0x3   :  { %12 = vsyncpa [#allocation3], 0 }
   0x4   :  { %14 = vsyncpa [#allocation3 + $0x1], 0 }
   0x5   :  { %15 = vsyncpa [#allocation5], 0 }
   0x6   :  { %17 = vsyncpa [#allocation5 + $0x1], 0  ;;  %s1102_s21 = smov 0   ;;  %s1104_s22 = smov 0  }
   0x7   :  { %s1106_s23 = smov 0   ;;  %s1108_s24 = smov 0  }
   0x8   :  { %s1110_s25 = smov 0   ;;  %s1112_s26 = smov 0  }
   0x9 LB: > { %s1364_s27 = sadd.s32 4294967295, %s1060_s26   ;;  %s1362_s28 = sadd.s32 4294967294, %s1060_s26   ;;  %s1060_s26 = sphi %s1112_s26, %s23_s26   ;;  %s1056_s25 = sphi %s1110_s25, %s1386_s25   ;;  %s1052_s24 = sphi %s1108_s24, %s1385_s24   ;;  %s1048_s23 = sphi %s1106_s23, %s1384_s23   ;;  %s1044_s22 = sphi %s1104_s22, %s1383_s22   ;;  %s1040_s21 = sphi %s1102_s21, %s1382_s21  }
   0xa   : > { %s35_s29 = sadd.s32 1, %s1056_s25  ;;  %s154_s30 = sadd.s32 1, %s1048_s23 }
   0xb   : > { %p37_p0 = scmp.ge.s32.totalorder %s35_s29, 2  ;;  %p164_p1 = scmp.ne.s32.totalorder %s1048_s23, %s1044_s22 }
   0xc   : > { %p165_p2 = scmp.eq.s32.totalorder %s1364_s27, 1  ;;  %p170_p3 = scmp.ne.s32.totalorder %s1044_s22, %s1040_s21 }
   0xd   : > { %s1388_s29 = smov (%p37_p0, %s35_s29), 0  ;;  %p171_p5 = scmp.eq.s32.totalorder %s1362_s28, 1 }
   0xe   : > { %p1144_p4 = por %p165_p2, %p164_p1  ;;  %s151_s8 = ssub.s32 %s1056_s25, %s1388_s29 }
   0xf   : > { %p803_p6 = scmp.ge.s32.totalorder %s1060_s26, 1  ;;  %p152_p7 = scmp.eq.s32.totalorder %s151_s8, 0 }
  0x10   : > { %p1153_p8 = por %p171_p5, %p170_p3  ;;  %p285_p9 = scmp.lt.s32.totalorder %s1060_s26, 3 }
  0x11   : > { %s1159_s10 = scalar_select %p152_p7, %s1048_s23, %s154_s30  }
  0x12   : > { %p286_p10 = pnand %p803_p6, %p285_p9 }
  0x13   : > { %s807_s11 = sshll.u32 (!%p286_p10), %s1052_s24, 1  ;;  %s1369_s0 = sld [smem:[#allocation9_spill]] (!%p286_p10) }
  0x14   : > { %289 = sbr.rel (%p286_p10) target bundleno = 426 (0x1aa), region = 36  ;;  %p346_p11 = scmp.lt.s32.totalorder (!%p286_p10), %s807_s11, 3 }
  0x15   : > { %s1370_s1 = sld [smem:[#allocation10_spill]] (!%p286_p10)  ;;  %s1242_s17 = sshll.u32 (!%p286_p10), %s1052_s24, 7 }
  0x16   : > { %s1064_s24 = smov (!%p286_p10), [#allocation2]  }
  0x17   : > { %s932_s28 = sshll.u32 (!%p286_p10), %s1064_s24, 4  ;;  %s933_s28 = int_to_ptr.vmem [resolvable:$false] %s932_s28 }
  0x19   : > { %v1062_v0 = vmov 0   ;;  %s1390_s11 = smov (!%p346_p11, %s807_s11), 3  ;;  %v1063_v3 = vmov 0.0   ;;  %vm398_vm4 = vcmask 7168   ;;  %v473_v35 = vlaneseq }
  0x1a   : > { %904 = vset.pattern.permute.xlu0 %v1062_v0  ;;  %905 = vset.pattern.permute.xlu1 %v1062_v0  ;;  %s1162_s12 = sshll.u32 %s1390_s11, 3  ;;  %vm455_vm10 = vcmask 31744   ;;  %vm569_vm14 = vcmask 64512   ;;  %s607_s11 = scalar_lea.hbm %s1359_s4, %s1242_s17 }
  0x1b   : > { %s373_s15 = scalar_lea.vmem %s1358_s3, %s1162_s12  ;;  %s365_s18 = scalar_lea.vmem %s1357_s2, %s1162_s12  ;;  %v474_v39 = vand.u32 127, %v473_v35 }
  0x1c   : > { %v383_v1 = vld [vmem:[%s373_s15] sm:$0xff]  ;;  %v384_v2 = vld [vmem:[%s373_s15 + $0x8] sm:$0xff]  ;;  %s349_s30 = scalar_lea.vmem %s1369_s0, %s1162_s12  ;;  %s357_s13 = scalar_lea.vmem %s1370_s1, %s1162_s12 }
  0x1d   : > { %477 = vperm.xlu0 %904, %v383_v1   ;;  %vm391_vm0 = vcmp.gt.s32.totalorder %v383_v1, 4294967295  ;;  %vm385_vm1 = vcmp.gt.s32.totalorder %v383_v1, 0  ;;  %vm392_vm2 = vcmp.gt.s32.totalorder %v384_v2, 4294967295  ;;  %vm386_vm3 = vcmp.gt.s32.totalorder %v384_v2, 0  ;;  %v1176_v19 = vld [vmem:[%s365_s18] sm:$0xff]  ;;  %v1179_v21 = vld [vmem:[%s365_s18 + $0x8] sm:$0xff] }
  0x1e   : > { %v815_v4 = vsel %vm385_vm1, 1.0, %v1063_v3  ;;  %v816_v5 = vsel %vm386_vm3, 1.0, %v1063_v3  ;;  %v817_v7 = vsel %vm391_vm0, 1.0, %v1063_v3  ;;  %v818_v8 = vsel %vm392_vm2, 1.0, %v1063_v3  ;;  %v424_v31 = vld [vmem:[%s349_s30] sm:$0xff]  ;;  %v425_v33 = vld [vmem:[%s349_s30 + $0x8] sm:$0xff] }
  0x1f   : > { %v906_v6 = vpack.i.bf16 %v816_v5, %v815_v4  ;;  %v911_v9 = vpack.i.bf16 %v818_v8, %v817_v7  ;;  %v388_v10 = vsel %vm386_vm3, 1, %v1062_v0  ;;  %v387_v11 = vsel %vm385_vm1, 1, %v1062_v0  ;;  %v426_v32 = vld [vmem:[%s357_s13] sm:$0xff]  ;;  %v427_v34 = vld [vmem:[%s357_s13 + $0x8] sm:$0xff]  ;;  %s327_s12 = sand.u32 1, %s1044_s22  }
  0x20   : > { %v399_v12 = vsel %vm398_vm4, %v387_v11, 0  ;;  %v400_v13 = vsel %vm398_vm4, %v388_v10, 0  ;;  %v488_v20 = vand.u32 2147483647, %v1176_v19  ;;  %v489_v23 = vand.u32 2147483647, %v1179_v21 }
  0x21   : > { %480 = vperm.xlu0 %904, %v384_v2   ;;  %907 = vperm.xlu1 %905, %v906_v6   ;;  %v401_v14 = vadd.s32 %v400_v13, %v399_v12  ;;  %v428_v36 = vsub.f32 %v424_v31, %v426_v32  ;;  %v429_v38 = vsub.f32 %v425_v33, %v427_v34  ;;  %vm500_vm5 = vcmp.ge.f32.partialorder %v1176_v19, 0.0  ;;  %s1236_s14 = sshll.u32 %s327_s12, 3  ;;  %s586_s13 = scalar_lea.sflag [#allocation3], %s327_s12 }
  0x22   : > { %v490_v22 = vsub.f32 0.0, %v488_v20  ;;  %v491_v25 = vsub.f32 0.0, %v489_v23  ;;  %v475_v47 = vadd.s32 1, %v474_v39  ;;  %vm501_vm6 = vcmp.ge.f32.partialorder %v1179_v21, 0.0  ;;  %s1363_s16 = scalar_lea.vmem [#allocation6], %s1236_s14  ;;  %s329_s18 = scalar_lea.vmem [#allocation2], %s1236_s14 }
  0x23   : > { %v403_v15 = vshrl.u32 %v401_v14, 16  ;;  %v402_v17 = vand.u32 65535, %v401_v14  ;;  %v430_v41 = vand.u32 2147483647, %v428_v36  ;;  %v434_v42 = vmul.f32 0.5, %v428_v36  ;;  %s609_s19 = sshll.u32 %s329_s18, 4  ;;  %s610_s19 = int_to_ptr.vmem [resolvable:$true] %s609_s19 }
  0x24   : > { %v492_v24 = vmul.f32 1.442695, %v490_v22  ;;  %v494_v26 = vmul.f32 1.442695, %v491_v25  ;;  %v431_v44 = vand.u32 2147483647, %v429_v38  ;;  %p935_p1 = scmp.lt.s32.totalorder %s610_s19, %s933_s28 }
  0x25   : > { %912 = vperm.xlu1 %905, %v911_v9   ;;  %v405_v16 = vcvt.s32.f32 %v403_v15  ;;  %v404_v18 = vcvt.s32.f32 %v402_v17  ;;  %v435_v45 = vmul.f32 0.5, %v429_v38  ;;  %v436_v50 = vmul.f32 %v434_v42, %v428_v36 }
  0x26   : > { %916 = vpow2.f32 %v492_v24  ;;  %v819_v51 = vadd.f32 -0.5, %v430_v41  ;;  %vm1196_vm7 = vcmp.lt.f32.partialorder %v430_v41, 1.0  ;;  %v820_v54 = vadd.f32 -0.5, %v431_v44 }
  0x27   : > { %918 = vpow2.f32 %v494_v26  ;;  %v437_v53 = vmul.f32 %v435_v45, %v429_v38  ;;  %vm1201_vm8 = vcmp.lt.f32.partialorder %v431_v44, 1.0  ;;  %v528_v62 = vmax.f32 %v1176_v19, 0.0 }
  0x28   : > { %v529_v63 = vmax.f32 %v1179_v21, 0.0  ;;  %v440_v2 = vsel %vm1196_vm7, %v436_v50, %v819_v51 }
  0x29   : > { %v441_v5 = vsel %vm1201_vm8, %v437_v53, %v820_v54 }
  0x33   : > { %v917_v27 = vpop.eup %916 }
  0x34   : > { %v496_v28 = vadd.f32 1.0, %v917_v27  ;;  %v1182_v29 = vpop.eup %918  ;;  %v537_v46 = vmul.f32 -0.5, %v917_v27  ;;  %v540_v59 = vand.u32 2147483647, %v917_v27 }
  0x35   : > { %v497_v30 = vadd.f32 1.0, %v1182_v29  ;;  %v546_v55 = vmul.f32 -0.5, %v1182_v29  ;;  %v549_v7 = vand.u32 2147483647, %v1182_v29 }
  0x36   : > { %920 = vrcp.f32 %v496_v28  ;;  %v538_v58 = vadd.f32 1.0, %v537_v46  ;;  %vm1216_vm11 = vcmp.lt.f32.partialorder %v540_v59, 0.0004427343 }
  0x37   : > { %922 = vrcp.f32 %v497_v30  ;;  %v547_v6 = vadd.f32 1.0, %v546_v55  ;;  %vm1222_vm13 = vcmp.lt.f32.partialorder %v549_v7, 0.0004427343 }
  0x38   : > { %924 = vlog2.f32 %v496_v28  ;;  %v539_v11 = vmul.f32 %v917_v27, %v538_v58 }
  0x39   : > { %926 = vlog2.f32 %v497_v30  ;;  %v548_v25 = vmul.f32 %v1182_v29, %v547_v6 }
  0x40   : > { %408 = vadd.xlane.f32.xlu0 %v405_v16 }
  0x43   : > { %v921_v37 = vpop.eup %920 }
  0x44   : > { %v502_v40 = vmul.f32 %v921_v37, %v917_v27  ;;  %v923_v43 = vpop.eup %922 }
  0x45   : > { %v503_v49 = vmul.f32 %v923_v43, %v1182_v29  ;;  %v925_v60 = vpop.eup %924 }
  0x46   : > { %v504_v48 = vsel %vm500_vm5, %v921_v37, %v502_v40  ;;  %v536_v10 = vmul.f32 0.6931472, %v925_v60  ;;  %v927_v23 = vpop.eup %926 }
  0x47   : > { %v508_v61 = vsub.f32 1.0, %v504_v48  ;;  %v505_v1 = vsel %vm501_vm6, %v923_v43, %v503_v49  ;;  %v545_v37 = vmul.f32 0.6931472, %v927_v23 }
  0x48   : > { %v509_v15 = vsub.f32 1.0, %v505_v1  ;;  %v542_v36 = vsel %vm1216_vm11, %v539_v11, %v536_v10 }
  0x49   : > { %406 = vadd.xlane.f32.xlu1 %v404_v18 }
  0x98   : > { %v478_v56 = vpop.permute.xlu0 %477 }
  0x99   : > { %vm482_vm9 = vcmp.eq.s32.totalorder %v478_v56, %v475_v47 }
  0x9a   : > { %v821_v0 = vsel %vm482_vm9, 1.0, %v1063_v3 }
  0x9b   : > { %v510_v4 = vsub.f32 1.0, %v821_v0  ;;  %v530_v8 = vmul.f32 %v821_v0, %v1176_v19  ;;  %v506_v13 = vmul.f32 %v821_v0, %v504_v48  ;;  %v518_v27 = vmul.f32 0.25, %v821_v0 }
  0x9c   : > { %v481_v9 = vpop.permute.xlu0 %480  ;;  %v908_v16 = vpop.permute.xlu1 %907 }
  0x9d   : > { %v512_v14 = vmul.f32 %v510_v4, %v508_v61  ;;  %vm483_vm12 = vcmp.eq.s32.totalorder %v481_v9, %v475_v47  ;;  %v520_v17 = vmul.f32 0.75, %v510_v4  ;;  %v910_v20 = vunpack.i.h.bf16 %v908_v16 }
  0x9e   : > { %v822_v18 = vsel %vm483_vm12, 1.0, %v1063_v3  ;;  %v909_v22 = vunpack.i.l.bf16 %v908_v16  ;;  %v532_v28 = vsub.f32 %v528_v62, %v530_v8 }
  0x9f   : > { %v514_v24 = vadd.f32 %v512_v14, %v506_v13  ;;  %v511_v19 = vsub.f32 1.0, %v822_v18  ;;  %v454_v31 = vmul.f32 %v910_v20, %v441_v5  ;;  %v507_v33 = vmul.f32 %v822_v18, %v505_v1 }
  0xa0   : > { %v453_v30 = vmul.f32 %v909_v22, %v440_v2  ;;  %v531_v3 = vmul.f32 %v822_v18, %v1179_v21  ;;  %v522_v35 = vadd.f32 %v520_v17, %v518_v27  ;;  %v519_v42 = vmul.f32 0.25, %v822_v18  ;;  %v913_v43 = vpop.permute.xlu1 %912 }
  0xa1   : > { %v516_v32 = vsub.f32 1.0, %v514_v24  ;;  %v513_v34 = vmul.f32 %v511_v19, %v509_v15  ;;  %v521_v40 = vmul.f32 0.75, %v511_v19  ;;  %v457_v41 = vsel %vm455_vm10, %v454_v31, 0.0 }
  0xa2   : > { %v456_v29 = vsel %vm455_vm10, %v453_v30, 0.0  ;;  %v533_v46 = vsub.f32 %v529_v63, %v531_v3  ;;  %v552_v48 = vadd.f32 %v542_v36, %v532_v28  ;;  %v551_v21 = vsel %vm1222_vm13, %v548_v25, %v545_v37 }
  0xa3   : > { %v524_v38 = vmul.f32 %v516_v32, %v516_v32  ;;  %v515_v39 = vadd.f32 %v513_v34, %v507_v33  ;;  %v458_v44 = vadd.f32 %v457_v41, %v456_v29  ;;  %v523_v49 = vadd.f32 %v521_v40, %v519_v42 }
  0xa4   : > { %v914_v51 = vunpack.i.l.bf16 %v913_v43  ;;  %v553_v54 = vadd.f32 %v551_v21, %v533_v46  ;;  %v915_v55 = vunpack.i.h.bf16 %v913_v43 }
  0xa5   : > { %v517_v45 = vsub.f32 1.0, %v515_v39  ;;  %v526_v47 = vmul.f32 %v524_v38, %v522_v35  ;;  %459 = vadd.xlane.f32.xlu0 %v458_v44 }
  0xa7   : > { %v525_v50 = vmul.f32 %v517_v45, %v517_v45  ;;  %v555_v52 = vmul.f32 %v552_v48, %v526_v47 }
  0xa9   : > { %v527_v53 = vmul.f32 %v525_v50, %v523_v49  ;;  %v567_v57 = vmul.f32 %v914_v51, %v555_v52 }
  0xab   : > { %v556_v56 = vmul.f32 %v553_v54, %v527_v53  ;;  %v570_v59 = vsel %vm569_vm14, %v567_v57, 0.0 }
  0xad   : > { %v568_v58 = vmul.f32 %v915_v55, %v556_v56 }
  0xaf   : > { %v571_v60 = vsel %vm569_vm14, %v568_v58, 0.0 }
  0xb0   : > { %v572_v61 = vadd.f32 %v571_v60, %v570_v59 }
  0xb2   : > { %573 = vadd.xlane.f32.xlu0 %v572_v61 }
  0xc9   : > { %v409_v62 = vpop.xlane.xlu0 %408 }
  0xca   : > { %v411_v63 = vcvt.f32.s32 %v409_v62 }
  0xcc   : > { %v412_v0 = vshll.u32 %v411_v63, 16 }
  0xd2   : > { %v407_v1 = vpop.xlane.xlu1 %406 }
  0xd3   : > { %v410_v2 = vcvt.f32.s32 %v407_v1 }
  0xd5   : > { %v413_v4 = vadd.s32 %v412_v0, %v410_v2 }
  0xd7   : > { %v414_v5 = vrot.slane %v413_v4, 4 }
  0xd9   : > { %v415_v6 = vadd.s32 %v414_v5, %v413_v4 }
  0xdb   : > { %v416_v7 = vrot.slane %v415_v6, 2 }
  0xdd   : > { %v417_v8 = vadd.s32 %v416_v7, %v415_v6 }
  0xdf   : > { %v418_v9 = vrot.slane %v417_v8, 1 }
  0xe1   : > { %v419_v10 = vadd.s32 %v418_v9, %v417_v8 }
  0xe3   : > { %831 = vpush %v419_v10 }
 0x114   : > { %s832_s15 = spop %831 }
 0x115   : > { %v421_v11 = vstv %s832_s15  ;;  %s928_s15 = scalar_lea.vmem %s610_s19, 128 }
 0x116   : > { %423 = vst [vmem:[%s1363_s16] sm:$0xff] %v421_v11  ;;  %p929_p12 = scmp.ne.s32.totalorder %s610_s19, %s928_s15  ;;  %s934_s16 = scalar_lea.vmem %s933_s28, 256 }
 0x117   : > { %p936_p2 = scmp.lt.s32.totalorder %s934_s16, %s928_s15 }
 0x118   : > { %p930_p13 = pnand %p929_p12, %p1144_p4 }
 0x119   : > { %p937_p3 = por %p936_p2, %p935_p1 }
 0x11a   : > { %p931_p0 = pneg %p930_p13 }
 0x11c   : > { %p938_p5 = pnand %p937_p3, %p931_p0 }
 0x12e   : > { %v460_v12 = vpop.xlane.xlu0 %459 }
 0x12f   : > { %v461_v13 = vrot.slane %v460_v12, 4 }
 0x131   : > { %v462_v14 = vadd.f32 %v461_v13, %v460_v12 }
 0x133   : > { %v463_v15 = vrot.slane %v462_v14, 2 }
 0x135   : > { %v464_v16 = vadd.f32 %v463_v15, %v462_v14 }
 0x137   : > { %v465_v17 = vrot.slane %v464_v16, 1 }
 0x139   : > { %v466_v18 = vadd.f32 %v465_v17, %v464_v16 }
 0x13b   : > { %v574_v20 = vpop.xlane.xlu0 %573  ;;  %833 = vpush %v466_v18 }
 0x13c   : > { %v575_v22 = vrot.slane %v574_v20, 4 }
 0x13e   : > { %v576_v23 = vadd.f32 %v575_v22, %v574_v20 }
 0x140   : > { %v577_v24 = vrot.slane %v576_v23, 2 }
 0x142   : > { %v578_v19 = vadd.f32 %v577_v24, %v576_v23 }
 0x144   : > { %v579_v25 = vrot.slane %v578_v19, 1 }
 0x146   : > { %v580_v26 = vadd.f32 %v579_v25, %v578_v19 }
 0x148   : > { %835 = vpush %v580_v26 }
 0x16c   : > { %s834_s20 = spop %833 }
 0x16d   : > { %v468_v27 = vstv %s834_s20 }
 0x16e   : > { %470 = vst [vmem:[%s329_s18] sm:$0xff] %v468_v27 }
 0x16f   : > { %941 = shalt.err (!%p938_p5)
}
 0x170   : > { %s942_s20 = scalar_lea.hbm %s607_s11, 128  ;;  %s946_s30 = scalar_lea.hbm %s1359_s4, 256 }
 0x171   : > { %p943_p6 = scmp.ne.s32.totalorder %s607_s11, %s942_s20  ;;  %p947_p10 = scmp.lt.s32.totalorder %s607_s11, %s1359_s4 }
 0x172   : > { %p948_p11 = scmp.lt.s32.totalorder %s946_s30, %s942_s20 }
 0x173   : > { %p944_p7 = pnand %p943_p6, %p1144_p4 }
 0x174   : > { %p949_p12 = por %p948_p11, %p947_p10 }
 0x175   : > { %p945_p9 = pneg %p944_p7 }
 0x177   : > { %p950_p13 = pnand %p949_p12, %p945_p9 }
 0x179   : > { %953 = shalt.err (!%p950_p13)
}
 0x17a   : > { %837 = dma.vmem_to_hbm [thread:$0]  (%p1144_p4), %s610_s19, 128, %s607_s11, %s586_s13  }
 0x17b   : > { %s1379_s28 = sadd.s32 4294967295, %s1060_s26   ;;  %s336_s15 = scalar_lea.vmem [#allocation4], %s1236_s14 }
 0x17c   : > { %s1265_s16 = sand.u32 1, %s1379_s28   ;;  %s622_s27 = sshll.u32 %s336_s15, 4  ;;  %s1276_s27 = int_to_ptr.vmem [resolvable:$true] %s622_s27 }
 0x17d   : > { %s836_s24 = spop %835  ;;  %s1380_s20 = scalar_lea.vmem [#allocation6], %s1236_s14 }
 0x17e   : > { %s635_s12 = sshll.u32 %s1380_s20, 4  ;;  %v582_v28 = vstv %s836_s24  ;;  %s1274_s8 = scalar_lea.hbm %s1360_s5, %s1242_s17  ;;  %s1284_s12 = int_to_ptr.vmem [resolvable:$true] %s635_s12 }
 0x17f   : > { %s1282_s19 = scalar_lea.hbm %s1361_s6, %s1242_s17  ;;  %584 = vst [vmem:[%s336_s15] sm:$0xff] %v582_v28  ;;  %s591_s14 = scalar_lea.sflag [#allocation5], %s1265_s16 }
 0x180   : > { %s954_s11 = scalar_lea.vmem %s1276_s27, 128  ;;  %s1065_s13 = smov [#allocation4]  }
 0x181   : > { %p955_p0 = scmp.ne.s32.totalorder %s1276_s27, %s954_s11  ;;  %s958_s28 = sshll.u32 %s1065_s13, 4  ;;  %s959_s28 = int_to_ptr.vmem [resolvable:$false] %s958_s28 }
 0x182   : > { %s960_s24 = scalar_lea.vmem %s959_s28, 256  ;;  %p961_p3 = scmp.lt.s32.totalorder %s1276_s27, %s959_s28 }
 0x183   : > { %p956_p1 = pnand %p955_p0, %p1144_p4  ;;  %p962_p5 = scmp.lt.s32.totalorder %s960_s24, %s954_s11 }
 0x185   : > { %p957_p2 = pneg %p956_p1  ;;  %p963_p6 = por %p962_p5, %p961_p3 }
 0x187   : > { %p964_p7 = pnand %p963_p6, %p957_p2 }
 0x189   : > { %967 = shalt.err (!%p964_p7)
}
 0x18a   : > { %s968_s0 = scalar_lea.hbm %s1274_s8, 128  ;;  %s972_s15 = scalar_lea.hbm %s1360_s5, 256 }
 0x18b   : > { %p969_p9 = scmp.ne.s32.totalorder %s1274_s8, %s968_s0  ;;  %p973_p12 = scmp.lt.s32.totalorder %s1274_s8, %s1360_s5 }
 0x18c   : > { %p974_p13 = scmp.lt.s32.totalorder %s972_s15, %s968_s0 }
 0x18d   : > { %p970_p10 = pnand %p969_p9, %p1144_p4 }
 0x18e   : > { %p975_p0 = por %p974_p13, %p973_p12 }
 0x18f   : > { %p971_p11 = pneg %p970_p10 }
 0x191   : > { %p976_p1 = pnand %p975_p0, %p971_p11 }
 0x193   : > { %979 = shalt.err (!%p976_p1)
}
 0x194   : > { %838 = dma.vmem_to_hbm [thread:$0]  (%p1144_p4), %s1276_s27, 128, %s1274_s8, %s591_s14  }
 0x195   : > { %s980_s30 = scalar_lea.vmem %s1284_s12, 128  ;;  %s1066_s11 = smov [#allocation6]  }
 0x196   : > { %p981_p2 = scmp.ne.s32.totalorder %s1284_s12, %s980_s30  ;;  %s984_s13 = sshll.u32 %s1066_s11, 4  ;;  %s985_s13 = int_to_ptr.vmem [resolvable:$false] %s984_s13 }
 0x197   : > { %s986_s28 = scalar_lea.vmem %s985_s13, 256  ;;  %p987_p6 = scmp.lt.s32.totalorder %s1284_s12, %s985_s13 }
 0x198   : > { %p982_p3 = pnand %p981_p2, %p1144_p4  ;;  %p988_p7 = scmp.lt.s32.totalorder %s986_s28, %s980_s30 }
 0x19a   : > { %p983_p5 = pneg %p982_p3  ;;  %p989_p9 = por %p988_p7, %p987_p6 }
 0x19c   : > { %p990_p10 = pnand %p989_p9, %p983_p5 }
 0x19e   : > { %993 = shalt.err (!%p990_p10)
}
 0x19f   : > { %s994_s24 = scalar_lea.hbm %s1282_s19, 128  ;;  %s998_s0 = scalar_lea.hbm %s1361_s6, 256 }
 0x1a0   : > { %p995_p11 = scmp.ne.s32.totalorder %s1282_s19, %s994_s24  ;;  %p999_p0 = scmp.lt.s32.totalorder %s1282_s19, %s1361_s6 }
 0x1a1   : > { %p1000_p1 = scmp.lt.s32.totalorder %s998_s0, %s994_s24 }
 0x1a2   : > { %p996_p12 = pnand %p995_p11, %p1144_p4 }
 0x1a3   : > { %p1001_p2 = por %p1000_p1, %p999_p0 }
 0x1a4   : > { %p997_p13 = pneg %p996_p12 }
 0x1a6   : > { %p1002_p3 = pnand %p1001_p2, %p997_p13 }
 0x1a8   : > { %1005 = shalt.err (!%p1002_p3)
}
 0x1a9   : > { %839 = dma.vmem_to_hbm [thread:$0]  (%p1144_p4), %s1284_s12, 128, %s1282_s19, %s591_s14  }
 0x1aa PF: > { %p853_p5 = scmp.ge.s32.totalorder %s1060_s26, 2  ;;  %s647_s15 = sand.u32 1, %s1040_s21  }
 0x1ab   : > { %s648_s20 = scalar_lea.sflag [#allocation3], %s647_s15 }
 0x1ac   : > { %p844_p6 = pnand %p853_p5, %p1153_p8 }
 0x1ae   : > { %p845_p7 = pneg %p844_p6 }
 0x1b0   : > { %1031 = dma.done.wait (%p845_p7), %s648_s20, 128  }
 0x1b1   : > { %1033 = vsyncadd (%p845_p7), %s648_s20, 4294967168  ;;  %s1381_s18 = sadd.s32 4294967294, %s1060_s26  }
 0x1b2   : > { %s656_s7 = sand.u32 1, %s1381_s18  }
 0x1b3   : > { %s657_s30 = scalar_lea.sflag [#allocation5], %s656_s7 }
 0x1b4   : > { %1035 = dma.done.wait (%p845_p7), %s657_s30, 256  }
 0x1b5   : > { %1037 = vsyncadd (%p845_p7), %s657_s30, 4294967040  ;;  %s23_s26 = sadd.s32 1, %s1060_s26   ;;  %s1382_s21 = smov %s1044_s22 }
 0x1b6   : > { %p20_p4 = scmp.ge.s32.totalorder %s23_s26, 4   ;;  %s1383_s22 = smov %s1048_s23 }
 0x1b7   : > { %s1384_s23 = smov %s1159_s10  ;;  %s1385_s24 = smov %s1056_s25 }
 0x1b8   : > { %s1386_s25 = smov %s1388_s29  ;;  %22 = sbr.rel (!%p20_p4) target bundleno = 9 (0x9), region = 116 }
 0x1bd   :  { %671 = vsyncpa [#allocation3], 1 }
 0x1be   :  { %673 = vsyncpa [#allocation3 + $0x1], 1 }
 0x1bf   :  { %674 = vsyncpa [#allocation5], 1 }
 0x1c0   :  { %676 = vsyncpa [#allocation5 + $0x1], 1 }

</bundles_post_ra>
